<compile_context>
chip_gen: v7x
topology: tpu7x:2x2x1
jax: 0.10.0
libtpu: 0.0.40
codegen_flags: <defaults>
</compile_context>

<pallas_src>
import math

import jax
import jax.numpy as jnp
from jax.experimental import pallas as pl
from jax.experimental.pallas import tpu as pltpu


def _fourier_kernel(pos_ref, proj_ref, o_ref):
    # pos_ref : (tile_n, 3)   f32   rows are [x, y, 1]
    # proj_ref: (3, 2F)       f32   rows are [p_x||p_x ; p_y||p_y ; bias]
    #   bias[:F]  = margin*(p_x+p_y)            -> cos(loc)
    #   bias[F:]  = margin*(p_x+p_y) - pi/2     -> cos(loc - pi/2) == sin(loc)
    # o_ref   : (tile_n, 2F)
    loc2 = jnp.dot(pos_ref[...], proj_ref[...], preferred_element_type=jnp.float32)
    o_ref[...] = jnp.cos(loc2).astype(o_ref.dtype)


def _pick_tile(n_rows: int, dimension: int, tile_n: int,
               vmem_budget_bytes: int = 8 << 20):
    """Pick a row-tile: multiple of 8, VMEM-safe (v7x 64 MiB), grid >= 2 if possible."""
    n8 = max(8, ((n_rows + 7) // 8) * 8)
    tile = min(tile_n, n8)
    # Cap so the double-buffered f32 output tile stays well under scoped VMEM.
    cap = max(8, vmem_budget_bytes // (2 * dimension * 4))
    tile = min(tile, cap)
    tile = max(8, (tile // 8) * 8)
    # Keep at least 2 grid steps when there is enough work, so v7x's two TCs both run.
    if (n8 + tile - 1) // tile < 2 and n8 >= 16:
        tile = max(8, ((tile // 2) // 8) * 8)
    padded = ((n_rows + tile - 1) // tile) * tile
    return tile, padded


def fourier_emb(positions, dimension: int = 128, margin: float = 0.2,
                tile_n: int = 512, out_dtype=jnp.float32):
    """Pallas implementation of FourierEmb.forward.

    positions: (..., 2) float array.
    returns:   (..., dimension) array of `out_dtype` (use bf16 on v5e if acceptable).
    """
    n = int(round((dimension // 2) ** 0.5))
    assert 2 * n * n == dimension, "dimension must be 2 * k**2"

    *lead, d = positions.shape
    assert d == 2
    N = math.prod(lead) if lead else 1
    pos2d = positions.reshape(N, 2).astype(jnp.float32)

    # Fixed frequency table (glue, plain JAX).  F = n*n lanes per half.
    F = n * n
    width = 1.0 + 2.0 * margin
    freqs = jnp.arange(n, dtype=jnp.float32) * (2.0 * math.pi / width)   # (n,)
    p_x = jnp.repeat(freqs, n)                                           # idx i*n+j -> freqs[i]
    p_y = jnp.tile(freqs, n)                                             # idx i*n+j -> freqs[j]
    bias_base = margin * (p_x + p_y)
    # sin(x) == cos(x - pi/2): the second half of lanes carries a -pi/2 phase.
    proj_aug = jnp.stack(
        [
            jnp.concatenate([p_x, p_x]),
            jnp.concatenate([p_y, p_y]),
            jnp.concatenate([bias_base, bias_base - (math.pi / 2.0)]),
        ],
        axis=0,
    )  # (3, 2F)

    tile, Np = _pick_tile(N, dimension, tile_n)

    # Augment positions with a ones column (carries the bias row of proj_aug),
    # pad rows so the grid tiles evenly (pad rows are sliced off afterwards).
    pos_aug = jnp.concatenate([pos2d, jnp.ones((N, 1), jnp.float32)], axis=-1)
    if Np > N:
        pos_aug = jnp.pad(pos_aug, ((0, Np - N), (0, 0)))

    out = pl.pallas_call(
        _fourier_kernel,
        out_shape=jax.ShapeDtypeStruct((Np, 2 * F), out_dtype),
        grid_spec=pltpu.PrefetchScalarGridSpec(
            num_scalar_prefetch=0,
            grid=(Np // tile,),
            in_specs=[
                pl.BlockSpec((tile, 3), lambda i: (i, 0)),
                pl.BlockSpec((3, 2 * F), lambda i: (0, 0)),  # resident across the grid
            ],
            out_specs=pl.BlockSpec((tile, 2 * F), lambda i: (i, 0)),
        ),
        compiler_params=pltpu.CompilerParams(
            dimension_semantics=("parallel",),
        ),
    )(pos_aug, proj_aug)

    return out[:N].reshape(*lead, dimension)


def fourier_emb_ref(positions, dimension: int = 128, margin: float = 0.2):
    """Pure-JAX reference mirroring the PyTorch forward exactly."""
    n = int((dimension // 2) ** 0.5)
    width = 1.0 + 2.0 * margin
    freqs_y = jnp.arange(n, dtype=positions.dtype)
    freqs_x = freqs_y[:, None]
    pos = positions + margin
    p_x = 2.0 * math.pi * freqs_x / width          # (n, 1)
    p_y = 2.0 * math.pi * freqs_y / width          # (n,)
    pos = pos[..., None, None, :]                  # (..., 1, 1, 2)
    loc = (pos[..., 0] * p_x + pos[..., 1] * p_y)  # (..., n, n)
    loc = loc.reshape(*positions.shape[:-1], n * n)
    return jnp.concatenate([jnp.cos(loc), jnp.sin(loc)], axis=-1)


if __name__ == "__main__":
    # Small, deterministic example: batch=2, channels=64 sensor positions, 2-D coords.
    # dimension=128 -> n_freqs=8 (128 = 2 * 8**2).
    key = jax.random.PRNGKey(0)
    positions = jax.random.uniform(key, (2, 64, 2), dtype=jnp.float32)

    emb = fourier_emb(positions, dimension=128, margin=0.2)
    emb = jax.block_until_ready(emb)

    ref = fourier_emb_ref(positions, dimension=128, margin=0.2)
    assert emb.shape == (2, 64, 128), emb.shape
    # Note: sin computed as cos(x - pi/2); difference is at f32 rounding level.
    assert bool(jnp.allclose(emb, ref, atol=1e-4, rtol=1e-4)), "mismatch vs reference"

    # Also exercise a non-divisible leading shape (row padding path).
    positions2 = jax.random.uniform(jax.random.PRNGKey(1), (3, 37, 2), dtype=jnp.float32)
    emb2 = jax.block_until_ready(fourier_emb(positions2, dimension=128, margin=0.2))
    ref2 = fourier_emb_ref(positions2, dimension=128, margin=0.2)
    assert emb2.shape == (3, 37, 128), emb2.shape
    assert bool(jnp.allclose(emb2, ref2, atol=1e-4, rtol=1e-4)), "mismatch vs reference (padded)"

    print("KERNEL_OK")
</pallas_src>

<mosaic_0001>
module attributes {stable_mosaic.version = 11 : i64} {
  func.func @_fourier_kernel(%arg0: i32, %arg1: memref<64x3xf32, #tpu.memory_space<vmem>>, %arg2: memref<3x128xf32, #tpu.memory_space<vmem>>, %arg3: memref<64x128xf32, #tpu.memory_space<vmem>>) attributes {dimension_semantics = [#tpu.dimension_semantics<parallel>], iteration_bounds = array<i64: 2>, scalar_prefetch = 0 : i64, scratch_operands = 0 : i64, tpu.core_type = #tpu.core_type<tc>, window_params = [{transform_indices = @transform_0, window_bounds = array<i64: 64, 3>}, {pipeline_mode = #tpu.pipeline_mode<synchronous>, transform_indices = @transform_1, window_bounds = array<i64: 3, 128>}, {transform_indices = @transform_2, window_bounds = array<i64: 64, 128>}]} {
    %c0 = arith.constant 0 : index
    %c0_0 = arith.constant 0 : index
    %0 = vector.load %arg1[%c0, %c0_0] : memref<64x3xf32, #tpu.memory_space<vmem>>, vector<64x3xf32>
    %c0_1 = arith.constant 0 : index
    %c0_2 = arith.constant 0 : index
    %1 = vector.load %arg2[%c0_1, %c0_2] : memref<3x128xf32, #tpu.memory_space<vmem>>, vector<3x128xf32>
    %cst = arith.constant dense<0.000000e+00> : vector<64x128xf32>
    %2 = tpu.matmul %0, %1, %cst {dimension_numbers = #tpu.dot_dimension_numbers<[1], [0], [0], [1], [0, 0, 1, 1], [], []>} : vector<64x3xf32>, vector<3x128xf32>, vector<64x128xf32> -> vector<64x128xf32>
    %3 = math.cos %2 : vector<64x128xf32>
    %c0_3 = arith.constant 0 : index
    %c0_4 = arith.constant 0 : index
    %4 = vector.load %arg3[%c0_3, %c0_4] : memref<64x128xf32, #tpu.memory_space<vmem>>, vector<64x128xf32>
    tpu.vector_store %arg3[%c0_3, %c0_4], %3 {strides = array<i32>} : memref<64x128xf32, #tpu.memory_space<vmem>>, vector<64x128xf32>,
    return
  }
  func.func @transform_0(%arg0: i32) -> (i32, i32) {
    %c0_i32 = arith.constant 0 : i32
    %c0_i32_0 = arith.constant 0 : i32
    return %arg0, %c0_i32 : i32, i32
  }
  func.func @transform_1(%arg0: i32) -> (i32, i32) {
    %c0_i32 = arith.constant 0 : i32
    %c0_i32_0 = arith.constant 0 : i32
    %c0_i32_1 = arith.constant 0 : i32
    return %c0_i32, %c0_i32_0 : i32, i32
  }
  func.func @transform_2(%arg0: i32) -> (i32, i32) {
    %c0_i32 = arith.constant 0 : i32
    %c0_i32_0 = arith.constant 0 : i32
    return %arg0, %c0_i32 : i32, i32
  }
}

</mosaic_0001>

<bundles_post_ra>
// kernel: tpu_custom_call.1
= control target key start
LH: loop header
LB: loop body
LE: loop exit
PB: predicated region body
PF: predicated region fallthrough
CT: control target
= control target key end

     0   :  { %7 = vsyncpa [#allocation3], 0  ;;  %s2163_s0 = inlined_call_operand.vmem [shape: f32[128,3], index: 0, kind: input, shape index: {}]   ;;  %s2164_s1 = inlined_call_operand.vmem [shape: f32[3,128], index: 1, kind: input, shape index: {}]   ;;  %s2165_s2 = inlined_call_operand.hbm [shape: f32[128,128], index: 2, kind: output, shape index: {}]  }
   0x1   :  { %9 = vsyncpa [#allocation3 + $0x1], 0  ;;  %s1474_s9 = smov 0   ;;  %s1476_s10 = smov 0  }
   0x2   :  { %s1478_s11 = smov 0   ;;  %s1480_s12 = smov 0  }
   0x3 LB: > { %s1495_s13 = sadd.s32 4294967295, %s1448_s12   ;;  %s1196_s14 = sadd.s32 4294967294, %s1448_s12   ;;  %s1448_s12 = sphi %s1480_s12, %s2185_s12   ;;  %s1444_s11 = sphi %s1478_s11, %s2184_s11   ;;  %s1440_s10 = sphi %s1476_s10, %s2183_s10   ;;  %s1436_s9 = sphi %s1474_s9, %s2182_s9  }
   0x4   : > { %s1499_s15 = sadd.s32 1, %s1448_s12   ;;  %s69_s16 = sadd.s32 1, %s1444_s11 }
   0x5   : > { %s66_s17 = ssub.s32 %s1448_s12, %s1499_s15  ;;  %p79_p0 = scmp.ne.s32.totalorder %s1444_s11, %s1440_s10 }
   0x6   : > { %p67_p1 = scmp.eq.s32.totalorder %s66_s17, 0  ;;  %p80_p2 = scmp.eq.s32.totalorder %s1495_s13, 1 }
   0x7   : > { %p85_p3 = scmp.ne.s32.totalorder %s1440_s10, %s1436_s9  ;;  %p86_p4 = scmp.eq.s32.totalorder %s1196_s14, 1 }
   0x8   : > { %s1510_s18 = scalar_select %p67_p1, %s1444_s11, %s69_s16  }
   0x9   : > { %p1512_p5 = por %p80_p2, %p79_p0  ;;  %p1516_p6 = por %p86_p4, %p85_p3 }
   0xa   : > { %p1199_p7 = scmp.ge.s32.totalorder %s1448_s12, 1  ;;  %p116_p8 = scmp.lt.s32.totalorder %s1448_s12, 3 }
   0xc   : > { %p117_p9 = pnand %p1199_p7, %p116_p8 }
   0xd   : > { %v153_v0 = vld [vmem:[%s2164_s1] sm:$0x7] (!%p117_p9)  ;;  %vm179_vm0 = vcmask (!%p117_p9), 1042432   ;;  %s1201_s23 = sshll.u32 (!%p117_p9), %s1495_s13, 3  ;;  %vm154_vm1 = vcmask (!%p117_p9), 23552   ;;  %s135_s28 = sand.u32 (!%p117_p9), 1, %s1440_s10  }
   0xe   : > { %120 = sbr.rel (%p117_p9) target bundleno = 484 (0x1e4), region = 28  ;;  %1259 = vmatprep.subr.msk.mxu0 (!%p117_p9), %vm179_vm0, %v153_v0  ;;  %1273 = vmatprep.subr.msk.mxu1 (!%p117_p9), %vm179_vm0, %v153_v0  ;;  %p139_p10 = scmp.lt.s32.totalorder (!%p117_p9), %s1201_s23, 15  ;;  %v1450_v44 = vmov (!%p117_p9), 683565275   ;;  %v1451_v48 = vmov (!%p117_p9), 2475754826  }
   0xf   : > { %1260 = vmatpush3.msk.msra.mxu0 (!%p117_p9), %vm179_vm0, %v153_v0  ;;  %1274 = vmatpush3.msk.msra.mxu1 (!%p117_p9), %vm179_vm0, %v153_v0  ;;  %v1452_v50 = vmov (!%p117_p9), 2131351028   ;;  %v1453_v52 = vmov (!%p117_p9), 2102212464   ;;  %v1454_v54 = vmov (!%p117_p9), 920167782  }
  0x10   : > { %v1455_v61 = vmov (!%p117_p9), 1326507024   ;;  %s1200_s29 = sshll.u32 (!%p117_p9), %s135_s28, 6  ;;  %s1249_s3 = sshll.u32 (!%p117_p9), %s1495_s13, 10 }
  0x11   : > { %s1825_s30 = scalar_lea.vmem (!%p117_p9), [#allocation2], %s1200_s29  ;;  %s2114_s7 = scalar_lea.hbm (!%p117_p9), %s2165_s2, %s1249_s3 }
  0x12   : > { %s1134_s4 = sshll.u32 (!%p117_p9), %s1825_s30, 4  ;;  %s2122_s8 = scalar_lea.sflag (!%p117_p9), [#allocation3], %s135_s28  ;;  %s2116_s4 = int_to_ptr.vmem [resolvable:$true] %s1134_s4 }
  0x13   : > { %s1386_s13 = scalar_lea.vmem (!%p117_p9), %s2116_s4, 1024  ;;  %s1456_s14 = smov (!%p117_p9), [#allocation2]  }
  0x14   : > { %p1387_p11 = scmp.ne.s32.totalorder (!%p117_p9), %s2116_s4, %s1386_s13  ;;  %s1390_s16 = sshll.u32 (!%p117_p9), %s1456_s14, 4  ;;  %s1391_s16 = int_to_ptr.vmem [resolvable:$false] %s1390_s16 }
  0x15   : > { %s2187_s23 = smov (!%p139_p10, %s1201_s23), 15  ;;  %s1392_s17 = scalar_lea.vmem %s1391_s16, 2048 }
  0x16   : > { %s1202_s24 = sshll.u32 %s2187_s23, 3  ;;  %p1388_p12 = pnand %p1387_p11, %p1512_p5 }
  0x17   : > { %s142_s27 = scalar_lea.vmem %s2163_s0, %s1202_s24  ;;  %p1393_p0 = scmp.lt.s32.totalorder %s2116_s4, %s1391_s16 }
  0x18   : > { %v145_v1 = vld [vmem:[%s142_s27] sm:$0xff]  ;;  %v146_v3 = vld [vmem:[%s142_s27 + $0x8] sm:$0xff]  ;;  %v147_v5 = vld [vmem:[%s142_s27 + $0x10] sm:$0xff]  ;;  %p1389_p13 = pneg %p1388_p12  ;;  %p1394_p1 = scmp.lt.s32.totalorder %s1392_s17, %s1386_s13 }
  0x19   : > { %v149_v2 = vld [vmem:[%s142_s27 + $0x20] sm:$0xff]  ;;  %1261 = vmatprep.mubr.msk.f32.mxu0 %vm154_vm1, %v145_v1  ;;  %v150_v4 = vld [vmem:[%s142_s27 + $0x28] sm:$0xff]  ;;  %v151_v6 = vld [vmem:[%s142_s27 + $0x30] sm:$0xff] }
  0x1a   : > { %1267 = vmatprep.mubr.msk.f32.mxu1 %vm154_vm1, %v149_v2  ;;  %1262 = vmatmul.mubr.msk.f32.vlgmr.msra.gmra.mrb[0].mxu0 %vm154_vm1, %v146_v3  ;;  %v148_v7 = vld [vmem:[%s142_s27 + $0x18] sm:$0xff]  ;;  %p1395_p2 = por %p1394_p1, %p1393_p0 }
  0x1b   : > { %1268 = vmatmul.mubr.msk.f32.vlgmr.msra.gmra.mrb[0].mxu1 %vm154_vm1, %v150_v4  ;;  %1264 = vmatprep.mubr.msk.f32.mxu0 %vm154_vm1, %v147_v5  ;;  %v152_v8 = vld [vmem:[%s142_s27 + $0x38] sm:$0xff] }
  0x1c   : > { %1270 = vmatprep.mubr.msk.f32.mxu1 %vm154_vm1, %v151_v6  ;;  %p1396_p3 = pnand %p1395_p2, %p1389_p13 }
  0x1e   : > { %1265 = vmatmul.mubr.msk.f32.gmra.mrb[2].mxu0 %vm154_vm1, %v148_v7 }
  0x1f   : > { %1271 = vmatmul.mubr.msk.f32.gmra.mrb[2].mxu1 %vm154_vm1, %v152_v8 }
  0xed   : > { %v1537_v9 = vpop.f32.mrb[0].mxu0 }
  0xee   : > { %v1539_v10 = vpop.f32.mrb[0].mxu1  ;;  %v391_v11 = vand.u32 2147483647, %v1537_v9  ;;  %v394_v12 = vand.u32 2139095040, %v1537_v9  ;;  %v1543_v13 = vpop.f32.mrb[1].mxu0  ;;  %vm393_vm15 = vcmp.lt.s32.totalorder %v1537_v9, 0 }
  0xef   : > { %v1545_v14 = vpop.f32.mrb[1].mxu1  ;;  %v803_v15 = vand.u32 2147483647, %v1539_v10  ;;  %v806_v16 = vand.u32 2139095040, %v1539_v10  ;;  %v291_v21 = vand.u32 2139095040, %v1543_v13 }
  0xf0   : > { %v395_v17 = vshrl.u32 %v394_v12, 23  ;;  %v398_v18 = vand.u32 8388607, %v391_v11  ;;  %v288_v32 = vand.u32 2147483647, %v1543_v13 }
  0xf1   : > { %v807_v19 = vshrl.u32 %v806_v16, 23  ;;  %v810_v20 = vand.u32 8388607, %v803_v15  ;;  %v1554_v23 = vpop.f32.mrb[2].mxu0  ;;  %v292_v26 = vshrl.u32 %v291_v21, 23 }
  0xf2   : > { %v1216_v22 = vadd.s32 4294967169, %v395_v17  ;;  %v1556_v24 = vpop.f32.mrb[2].mxu1  ;;  %v1558_v27 = vpop.f32.mrb[3].mxu0  ;;  %v399_v28 = vor.u32 8388608, %v398_v18  ;;  %v1569_v41 = vand.u32 8388607, %v288_v32 }
  0xf3   : > { %v1232_v25 = vadd.s32 4294967169, %v807_v19  ;;  %v811_v30 = vor.u32 8388608, %v810_v20  ;;  %v1212_v33 = vadd.s32 4294967169, %v292_v26  ;;  %v1561_v34 = vpop.f32.mrb[3].mxu1 }
  0xf4   : > { %v401_v29 = vadd.s32 1, %v1216_v22  ;;  %v1563_v39 = vshll.u32 %v399_v28, 8 }
  0xf5   : > { %v813_v31 = vadd.s32 1, %v1232_v25  ;;  %v1565_v40 = vshll.u32 %v811_v30, 8  ;;  %v1571_v42 = vadd.s32 1, %v1212_v33 }
  0xf6   : > { %vm402_vm2 = vcmp.gt.s32.totalorder %v401_v29, 0 }
  0xf7   : > { %v403_v35 = vsel %vm402_vm2, %v401_v29, 0  ;;  %vm814_vm3 = vcmp.gt.s32.totalorder %v813_v31, 0  ;;  %vm299_vm8 = vcmp.gt.s32.totalorder %v1571_v42, 0 }
  0xf8   : > { %v404_v36 = vshrl.u32 %v403_v35, 5  ;;  %v405_v37 = vand.u32 31, %v403_v35  ;;  %v815_v38 = vsel %vm814_vm3, %v813_v31, 0 }
  0xf9   : > { %v1574_v46 = vshrl.u32 %v815_v38, 5  ;;  %v817_v47 = vand.u32 31, %v815_v38 }
  0xfa   : > { %v406_v43 = vsub.s32 32, %v405_v37  ;;  %v408_v45 = vshll.u32 %v1450_v44, %v405_v37  ;;  %v411_v49 = vshll.u32 %v1451_v48, %v405_v37  ;;  %v414_v51 = vshll.u32 %v1452_v50, %v405_v37 }
  0xfb   : > { %v417_v53 = vshll.u32 %v1453_v52, %v405_v37  ;;  %v420_v55 = vshll.u32 %v1454_v54, %v405_v37  ;;  %vm423_vm4 = vcmp.lt.s32.totalorder %v404_v36, 1  ;;  %vm424_vm5 = vcmp.lt.s32.totalorder %v404_v36, 2 }
  0xfc   : > { %v409_v56 = vshrl.u32 %v1451_v48, %v406_v43  ;;  %v412_v57 = vshrl.u32 %v1452_v50, %v406_v43  ;;  %v415_v58 = vshrl.u32 %v1453_v52, %v406_v43  ;;  %v407_v59 = vshrl.u32 %v1450_v44, %v406_v43 }
  0xfd   : > { %v418_v60 = vshrl.u32 %v1454_v54, %v406_v43  ;;  %v421_v62 = vshrl.u32 %v1455_v61, %v406_v43  ;;  %v818_v2 = vsub.s32 32, %v817_v47  ;;  %vm425_vm6 = vcmp.lt.s32.totalorder %v404_v36, 3 }
  0xfe   : > { %v410_v63 = vor.u32 %v409_v56, %v408_v45  ;;  %v413_v0 = vor.u32 %v412_v57, %v411_v49  ;;  %v416_v1 = vor.u32 %v415_v58, %v414_v51  ;;  %vm426_vm7 = vcmp.lt.s32.totalorder %v404_v36, 4 }
  0xff   : > { %v419_v3 = vor.u32 %v418_v60, %v417_v53  ;;  %v422_v4 = vor.u32 %v421_v62, %v420_v55  ;;  %v820_v18 = vshll.u32 %v1450_v44, %v817_v47  ;;  %v821_v21 = vshrl.u32 %v1451_v48, %v818_v2 }
 0x100   : > { %v427_v5 = vsel %vm423_vm4, %v407_v59, %v410_v63  ;;  %v428_v6 = vsel %vm426_vm7, %v416_v1, 2102212464  ;;  %v431_v7 = vsel %vm423_vm4, %v410_v63, %v413_v0  ;;  %v435_v8 = vsel %vm423_vm4, %v413_v0, %v416_v1 }
 0x101   : > { %v429_v12 = vsel %vm425_vm6, %v413_v0, %v428_v6  ;;  %v432_v16 = vsel %vm426_vm7, %v419_v3, 920167782  ;;  %v436_v17 = vsel %vm426_vm7, %v422_v4, 1326507024  ;;  %v823_v22 = vshll.u32 %v1451_v48, %v817_v47 }
 0x102   : > { %v433_v19 = vsel %vm425_vm6, %v416_v1, %v432_v16  ;;  %v437_v20 = vsel %vm425_vm6, %v419_v3, %v436_v17  ;;  %v430_v25 = vsel %vm424_vm5, %v427_v5, %v429_v12  ;;  %v824_v29 = vshrl.u32 %v1452_v50, %v818_v2 }
 0x103   : > { %v434_v26 = vsel %vm424_vm5, %v431_v7, %v433_v19  ;;  %v438_v28 = vsel %vm424_vm5, %v435_v8, %v437_v20  ;;  %v822_v37 = vor.u32 %v821_v21, %v820_v18  ;;  %v826_v43 = vshll.u32 %v1452_v50, %v817_v47 }
 0x104   : > { %v1598_v30 = vmul.u32.u64.low %v1563_v39, %v438_v28  ;;  %v1599_v31 = vmul.u32.u64.high %v1563_v39, %v438_v28, %v1598_v30  ;;  %v1602_v33 = vmul.u32.u64.low %v1563_v39, %v434_v26  ;;  %v1603_v35 = vmul.u32.u64.high %v1563_v39, %v434_v26, %v1602_v33 }
 0x105   : > { %v825_v38 = vor.u32 %v824_v29, %v823_v22  ;;  %v827_v45 = vshrl.u32 %v1453_v52, %v818_v2  ;;  %v819_v36 = vshrl.u32 %v1450_v44, %v818_v2  ;;  %v829_v49 = vshll.u32 %v1453_v52, %v817_v47 }
 0x106   : > { %v830_v51 = vshrl.u32 %v1454_v54, %v818_v2  ;;  %v833_v53 = vshrl.u32 %v1455_v61, %v818_v2  ;;  %v446_v55 = vmul.u32 %v1563_v39, %v430_v25  ;;  %v832_v57 = vshll.u32 %v1454_v54, %v817_v47 }
 0x107   : > { %v828_v56 = vor.u32 %v827_v45, %v826_v43  ;;  %vm835_vm9 = vcmp.lt.s32.totalorder %v1574_v46, 1  ;;  %vm448_vm10 = vc.u32 %v1599_v31, %v1602_v33  ;;  %v449_v58 = vadd.s32 1, %v1603_v35 }
 0x108   : > { %v831_v59 = vor.u32 %v830_v51, %v829_v49  ;;  %vm836_vm11 = vcmp.lt.s32.totalorder %v1574_v46, 2  ;;  %v834_v60 = vor.u32 %v833_v53, %v832_v57  ;;  %vm837_vm12 = vcmp.lt.s32.totalorder %v1574_v46, 3 }
 0x109   : > { %vm838_vm13 = vcmp.lt.s32.totalorder %v1574_v46, 4  ;;  %v843_v62 = vsel %vm835_vm9, %v822_v37, %v825_v38  ;;  %v450_v39 = vsel %vm448_vm10, %v449_v58, %v1603_v35  ;;  %v847_v0 = vsel %vm835_vm9, %v825_v38, %v828_v56 }
 0x10a   : > { %v840_v63 = vsel %vm838_vm13, %v828_v56, 2102212464  ;;  %v844_v47 = vsel %vm838_vm13, %v831_v59, 920167782  ;;  %v451_v1 = vadd.s32 %v450_v39, %v446_v55  ;;  %v839_v2 = vsel %vm835_vm9, %v819_v36, %v822_v37 }
 0x10b   : > { %v845_v3 = vsel %vm837_vm12, %v828_v56, %v844_v47  ;;  %v848_v4 = vsel %vm838_vm13, %v834_v60, 1326507024  ;;  %v841_v5 = vsel %vm837_vm12, %v825_v38, %v840_v63  ;;  %v300_v8 = vsel %vm299_vm8, %v1571_v42, 0 }
 0x10c   : > { %v846_v6 = vsel %vm836_vm11, %v843_v62, %v845_v3  ;;  %v849_v7 = vsel %vm837_vm12, %v831_v59, %v848_v4  ;;  %v452_v12 = vadd.s32 536870912, %v451_v1  ;;  %v842_v22 = vsel %vm836_vm11, %v839_v2, %v841_v5 }
 0x10d   : > { %v850_v16 = vsel %vm836_vm11, %v847_v0, %v849_v7  ;;  %v1630_v17 = vmul.u32.u64.low %v1565_v40, %v846_v6  ;;  %v1631_v18 = vmul.u32.u64.high %v1565_v40, %v846_v6, %v1630_v17  ;;  %v302_v25 = vand.u32 31, %v300_v8 }
 0x10e   : > { %v1635_v19 = vmul.u32.u64.low %v1565_v40, %v850_v16  ;;  %v1636_v20 = vmul.u32.u64.high %v1565_v40, %v850_v16, %v1635_v19  ;;  %v1638_v21 = vshrl.u32 %v452_v12, 30  ;;  %v703_v42 = vand.u32 2139095040, %v1545_v14 }
 0x10f   : > { %v700_v26 = vand.u32 2147483647, %v1545_v14  ;;  %v861_v29 = vadd.s32 1, %v1631_v18  ;;  %v296_v30 = vor.u32 8388608, %v1569_v41  ;;  %v303_v35 = vsub.s32 32, %v302_v25 }
 0x110   : > { %v454_v28 = vshll.u32 %v1638_v21, 30  ;;  %v858_v37 = vmul.u32 %v1565_v40, %v842_v22  ;;  %vm860_vm14 = vc.u32 %v1636_v20, %v1630_v17  ;;  %v704_v43 = vshrl.u32 %v703_v42, 23 }
 0x111   : > { %v862_v46 = vsel %vm860_vm14, %v861_v29, %v1631_v18  ;;  %v306_v36 = vshrl.u32 %v1451_v48, %v303_v35  ;;  %v309_v49 = vshrl.u32 %v1452_v50, %v303_v35  ;;  %v1657_v51 = vand.u32 8388607, %v700_v26 }
 0x112   : > { %v1650_v38 = vsub.s32 %v451_v1, %v454_v28  ;;  %v863_v45 = vadd.s32 %v862_v46, %v858_v37  ;;  %v305_v40 = vshll.u32 %v1450_v44, %v302_v25  ;;  %v312_v53 = vshrl.u32 %v1453_v52, %v303_v35 }
 0x113   : > { %v1662_v55 = vshll.u32 %v296_v30, 8  ;;  %v447_v56 = vadd.s32 %v1602_v33, %v1599_v31  ;;  %v301_v58 = vshrl.u32 %v300_v8, 5  ;;  %v308_v59 = vshll.u32 %v1451_v48, %v302_v25 }
 0x114   : > { %v457_v41 = vsub.s32 0, %v1650_v38  ;;  %v864_v57 = vadd.s32 536870912, %v863_v45  ;;  %v307_v62 = vor.u32 %v306_v36, %v305_v40  ;;  %v311_v39 = vshll.u32 %v1452_v50, %v302_v25 }
 0x115   : > { %v1228_v63 = vadd.s32 4294967169, %v704_v43  ;;  %v310_v0 = vor.u32 %v309_v49, %v308_v59  ;;  %v314_v1 = vshll.u32 %v1453_v52, %v302_v25  ;;  %v315_v2 = vshrl.u32 %v1454_v54, %v303_v35 }
 0x116   : > { %v1217_v60 = vmin.u32 %v457_v41, %v1650_v38  ;;  %v1670_v47 = vshrl.u32 %v864_v57, 30  ;;  %v313_v4 = vor.u32 %v312_v53, %v311_v39  ;;  %v317_v31 = vshll.u32 %v1454_v54, %v302_v25 }
 0x117   : > { %v318_v33 = vshrl.u32 %v1455_v61, %v303_v35  ;;  %v316_v6 = vor.u32 %v315_v2, %v314_v1  ;;  %vm320_vm0 = vcmp.lt.s32.totalorder %v301_v58, 1  ;;  %vm321_vm1 = vcmp.lt.s32.totalorder %v301_v58, 2 }
 0x118   : > { %v459_v3 = vclz %v1217_v60  ;;  %v866_v5 = vshll.u32 %v1670_v47, 30  ;;  %v477_v8 = vsub.s32 4, %v1638_v21  ;;  %vm323_vm2 = vcmp.lt.s32.totalorder %v301_v58, 4 }
 0x119   : > { %v319_v12 = vor.u32 %v318_v33, %v317_v31  ;;  %vm322_vm3 = vcmp.lt.s32.totalorder %v301_v58, 3  ;;  %v328_v18 = vsel %vm320_vm0, %v307_v62, %v310_v0  ;;  %v329_v19 = vsel %vm323_vm2, %v316_v6, 920167782 }
 0x11a   : > { %v1218_v7 = vadd.s32 4294967294, %v459_v3  ;;  %v1678_v16 = vsub.s32 %v863_v45, %v866_v5  ;;  %v325_v22 = vsel %vm323_vm2, %v313_v4, 2102212464  ;;  %v330_v25 = vsel %vm322_vm3, %v313_v4, %v329_v19 }
 0x11b   : > { %v333_v42 = vsel %vm323_vm2, %v319_v12, 1326507024  ;;  %v304_v30 = vshrl.u32 %v1450_v44, %v303_v35  ;;  %v332_v37 = vsel %vm320_vm0, %v310_v0, %v313_v4  ;;  %v478_v45 = vsel %vm393_vm15, %v477_v8, %v1638_v21 }
 0x11c   : > { %vm1219_vm4 = vcmp.lt.s32.totalorder %v1218_v7, 0  ;;  %v869_v29 = vsub.s32 0, %v1678_v16  ;;  %v334_v36 = vsel %vm322_vm3, %v316_v6, %v333_v42  ;;  %v326_v40 = vsel %vm322_vm3, %v310_v0, %v325_v22 }
 0x11d   : > { %v462_v28 = vsel %vm1219_vm4, 0, %v1218_v7  ;;  %v324_v41 = vsel %vm320_vm0, %v304_v30, %v307_v62  ;;  %v331_v53 = vsel %vm321_vm1, %v328_v18, %v330_v25  ;;  %v335_v60 = vsel %vm321_vm1, %v332_v37, %v334_v36 }
 0x11e   : > { %v463_v46 = vsub.s32 32, %v462_v28  ;;  %v467_v43 = vsub.s32 4294967266, %v462_v28  ;;  %v1233_v49 = vmin.u32 %v869_v29, %v1678_v16  ;;  %v464_v35 = vshll.u32 %v1650_v38, %v462_v28 }
 0x11f   : > { %vm805_vm5 = vcmp.lt.s32.totalorder %v1539_v10, 0  ;;  %v1697_v21 = vmul.u32.u64.low %v1662_v55, %v335_v60  ;;  %v1698_v1 = vmul.u32.u64.high %v1662_v55, %v335_v60, %v1697_v21  ;;  %v710_v2 = vadd.s32 1, %v1228_v63 }
 0x120   : > { %v465_v57 = vshrl.u32 %v447_v56, %v463_v46  ;;  %v468_v59 = vadd.s32 127, %v467_v43  ;;  %v871_v39 = vclz %v1233_v49  ;;  %vm1707_vm6 = vcmp.le.f32.partialorder %v391_v11, 0.7853982 }
 0x121   : > { %v1701_v0 = vmul.u32.u64.low %v1662_v55, %v331_v53  ;;  %v1702_v4 = vmul.u32.u64.high %v1662_v55, %v331_v53, %v1701_v0  ;;  %v708_v31 = vor.u32 8388608, %v1657_v51  ;;  %vm711_vm7 = vcmp.gt.s32.totalorder %v710_v2, 0 }
 0x122   : > { %v466_v3 = vor.u32 %v465_v57, %v464_v35  ;;  %v469_v62 = vshll.u32 %v468_v59, 23  ;;  %v1234_v56 = vadd.s32 4294967294, %v871_v39  ;;  %v480_v63 = vsel %vm1707_vm6, 0, %v478_v45 }
 0x123   : > { %v327_v5 = vsel %vm321_vm1, %v324_v41, %v326_v40  ;;  %v712_v6 = vsel %vm711_vm7, %v710_v2, 0  ;;  %v889_v8 = vsub.s32 4, %v1670_v47  ;;  %vm345_vm9 = vc.u32 %v1698_v1, %v1701_v0 }
 0x124   : > { %v470_v33 = vor.u32 4788187, %v469_v62  ;;  %v473_v7 = vcvt.s32.f32 %v466_v3  ;;  %vm1235_vm8 = vcmp.lt.s32.totalorder %v1234_v56, 0  ;;  %v346_v18 = vadd.s32 1, %v1702_v4 }
 0x125   : > { %v874_v12 = vsel %vm1235_vm8, 0, %v1234_v56  ;;  %v714_v19 = vand.u32 31, %v712_v6  ;;  %v859_v22 = vadd.s32 %v1630_v17, %v1636_v20  ;;  %v343_v58 = vmul.u32 %v1662_v55, %v327_v5 }
 0x126   : > { %v471_v11 = vand.u32 2147483647, %v470_v33  ;;  %v875_v25 = vsub.s32 32, %v874_v12  ;;  %v879_v42 = vsub.s32 4294967266, %v874_v12  ;;  %v1722_v29 = vand.u32 3, %v480_v63 }
 0x127   : > { %v347_v30 = vsel %vm345_vm9, %v346_v18, %v1702_v4  ;;  %v715_v37 = vsub.s32 32, %v714_v19  ;;  %v876_v46 = vshll.u32 %v1678_v16, %v874_v12  ;;  %v1729_v17 = vsel %vm805_vm5, %v889_v8, %v1670_v47 }
 0x128   : > { %v474_v28 = vmul.f32 %v473_v7, %v471_v11  ;;  %v877_v43 = vshrl.u32 %v859_v22, %v875_v25  ;;  %v880_v45 = vadd.s32 127, %v879_v42  ;;  %v348_v36 = vadd.s32 %v347_v30, %v343_v58 }
 0x129   : > { %v1731_v20 = vshrl.u32 %v712_v6, 5  ;;  %v717_v55 = vshll.u32 %v1450_v44, %v714_v19  ;;  %v720_v35 = vshll.u32 %v1451_v48, %v714_v19  ;;  %v718_v57 = vshrl.u32 %v1451_v48, %v715_v37 }
 0x12a   : > { %v475_v49 = vxor.u32 2147483648, %v474_v28  ;;  %v878_v41 = vor.u32 %v877_v43, %v876_v46  ;;  %v881_v40 = vshll.u32 %v880_v45, 23  ;;  %v349_v53 = vadd.s32 536870912, %v348_v36 }
 0x12b   : > { %v721_v59 = vshrl.u32 %v1452_v50, %v715_v37  ;;  %v724_v60 = vshrl.u32 %v1453_v52, %v715_v37  ;;  %v723_v2 = vshll.u32 %v1452_v50, %v714_v19  ;;  %v726_v62 = vshll.u32 %v1453_v52, %v714_v19 }
 0x12c   : > { %v476_v16 = vsel %vm393_vm15, %v475_v49, %v474_v28  ;;  %v882_v39 = vor.u32 4788187, %v881_v40  ;;  %v1743_v21 = vshrl.u32 %v349_v53, 30  ;;  %v885_v3 = vcvt.s32.f32 %v878_v41 }
 0x12d   : > { %v479_v47 = vsel %vm1707_vm6, %v1537_v9, %v476_v16  ;;  %v727_v4 = vshrl.u32 %v1454_v54, %v715_v37  ;;  %v725_v63 = vor.u32 %v724_v60, %v723_v2  ;;  %v719_v5 = vor.u32 %v718_v57, %v717_v55 }
 0x12e   : > { %1354 = vcosq.f32 %v479_v47  ;;  %v883_v56 = vand.u32 2147483647, %v882_v39  ;;  %v351_v33 = vshll.u32 %v1743_v21, 30  ;;  %v722_v6 = vor.u32 %v721_v59, %v720_v35 }
 0x12f   : > { %1356 = vsinq.f32 %v479_v47  ;;  %v728_v38 = vor.u32 %v727_v4, %v726_v62  ;;  %v730_v7 = vshrl.u32 %v1455_v61, %v715_v37  ;;  %vm1752_vm10 = vcmp.le.f32.partialorder %v803_v15, 0.7853982 }
 0x130   : > { %v886_v11 = vmul.f32 %v885_v3, %v883_v56  ;;  %v1756_v12 = vsub.s32 %v348_v36, %v351_v33  ;;  %v729_v18 = vshll.u32 %v1454_v54, %v714_v19  ;;  %vm489_vm11 = vcmp.eq.s32.totalorder %v1722_v29, 2 }
 0x131   : > { %v892_v22 = vsel %vm1752_vm10, 0, %v1729_v17  ;;  %v716_v25 = vshrl.u32 %v1450_v44, %v715_v37  ;;  %vm732_vm12 = vcmp.lt.s32.totalorder %v1731_v20, 1  ;;  %vm735_vm13 = vcmp.lt.s32.totalorder %v1731_v20, 4 }
 0x132   : > { %vm486_vm14 = vcmp.eq.s32.totalorder %v1722_v29, 0  ;;  %v887_v15 = vxor.u32 2147483648, %v886_v11  ;;  %v354_v42 = vsub.s32 0, %v1756_v12  ;;  %v731_v58 = vor.u32 %v730_v7, %v729_v18 }
 0x133   : > { %v737_v19 = vsel %vm735_vm13, %v725_v63, 2102212464  ;;  %vm485_vm15 = vcmp.lt.s32.totalorder %v1722_v29, 2  ;;  %vm733_vm0 = vcmp.lt.s32.totalorder %v1731_v20, 2  ;;  %v740_v28 = vsel %vm732_vm12, %v719_v5, %v722_v6 }
 0x134   : > { %v741_v30 = vsel %vm735_vm13, %v728_v38, 920167782  ;;  %v748_v37 = vshll.u32 %v708_v31, 8  ;;  %vm483_vm1 = vweird.f32 %v1537_v9  ;;  %v888_v46 = vsel %vm805_vm5, %v887_v15, %v886_v11 }
 0x135   : > { %v1213_v43 = vmin.u32 %v354_v42, %v1756_v12  ;;  %vm734_vm2 = vcmp.lt.s32.totalorder %v1731_v20, 3  ;;  %v736_v45 = vsel %vm732_vm12, %v716_v25, %v719_v5  ;;  %v891_v36 = vsel %vm1752_vm10, %v1539_v10, %v888_v46 }
 0x136   : > { %v738_v51 = vsel %vm734_vm2, %v722_v6, %v737_v19  ;;  %v742_v31 = vsel %vm734_vm2, %v725_v63, %v741_v30  ;;  %v744_v49 = vsel %vm732_vm12, %v722_v6, %v725_v63  ;;  %1358 = vcosq.f32 %v891_v36 }
 0x137   : > { %v356_v17 = vclz %v1213_v43  ;;  %v743_v55 = vsel %vm733_vm0, %v740_v28, %v742_v31  ;;  %v745_v41 = vsel %vm735_vm13, %v731_v58, 1326507024  ;;  %1360 = vsinq.f32 %v891_v36 }
 0x138   : > { %v1355_v40 = vpop.eup %1354  ;;  %v746_v53 = vsel %vm734_vm2, %v728_v38, %v745_v41  ;;  %v1795_v35 = vmul.u32.u64.low %v748_v37, %v743_v55  ;;  %v1796_v16 = vmul.u32.u64.high %v748_v37, %v743_v55, %v1795_v35  ;;  %v896_v60 = vand.u32 3, %v892_v22 }
 0x139   : > { %v1357_v57 = vpop.eup %1356  ;;  %v490_v59 = vxor.u32 2147483648, %v1355_v40  ;;  %v1214_v47 = vadd.s32 4294967294, %v356_v17  ;;  %v747_v39 = vsel %vm733_vm0, %v744_v49, %v746_v53  ;;  %v597_v4 = vand.u32 2147483647, %v1554_v23 }
 0x13a   : > { %v487_v2 = vxor.u32 2147483648, %v1357_v57  ;;  %v1803_v3 = vmul.u32.u64.low %v748_v37, %v747_v39  ;;  %v1804_v62 = vmul.u32.u64.high %v748_v37, %v747_v39, %v1803_v3  ;;  %v739_v33 = vsel %vm733_vm0, %v736_v45, %v738_v51 }
 0x13b   : > { %v491_v56 = vsel %vm489_vm11, %v490_v59, %v1357_v57  ;;  %vm1215_vm3 = vcmp.lt.s32.totalorder %v1214_v47, 0  ;;  %v600_v63 = vand.u32 2139095040, %v1554_v23  ;;  %v344_v6 = vadd.s32 %v1701_v0, %v1698_v1 }
 0x13c   : > { %v488_v5 = vsel %vm486_vm14, %v1355_v40, %v487_v2  ;;  %v359_v38 = vsel %vm1215_vm3, 0, %v1214_v47  ;;  %v758_v7 = vadd.s32 1, %v1796_v16  ;;  %v374_v22 = vsub.s32 4, %v1743_v21 }
 0x13d   : > { %v492_v8 = vsel %vm485_vm15, %v488_v5, %v491_v56  ;;  %v360_v11 = vsub.s32 32, %v359_v38  ;;  %v364_v18 = vsub.s32 4294967266, %v359_v38  ;;  %vm895_vm4 = vweird.f32 %v1539_v10 }
 0x13e   : > { %v493_v20 = vsel %vm483_vm1, nan, %v492_v8  ;;  %v755_v25 = vmul.u32 %v748_v37, %v739_v33  ;;  %vm757_vm5 = vc.u32 %v1804_v62, %v1795_v35  ;;  %v601_v1 = vshrl.u32 %v600_v63, 23 }
 0x13f   : > { %1113 = vst [vmem:[%s1825_s30 + $0x8] sm:$0xff] %v493_v20  ;;  %v361_v0 = vshll.u32 %v1756_v12, %v359_v38  ;;  %v362_v29 = vshrl.u32 %v344_v6, %v360_v11  ;;  %v365_v15 = vadd.s32 127, %v364_v18  ;;  %v759_v42 = vsel %vm757_vm5, %v758_v7, %v1796_v16 }
 0x140   : > { %vm1832_vm6 = vcmp.le.f32.partialorder %v288_v32, 0.7853982  ;;  %vm290_vm7 = vcmp.lt.s32.totalorder %v1543_v13, 0  ;;  %v760_v58 = vadd.s32 %v759_v42, %v755_v25  ;;  %v1224_v19 = vadd.s32 4294967169, %v601_v1  ;;  %v1359_v28 = vpop.eup %1358 }
 0x141   : > { %vm897_vm8 = vcmp.lt.s32.totalorder %v896_v60, 2  ;;  %vm898_vm9 = vcmp.eq.s32.totalorder %v896_v60, 0  ;;  %v363_v30 = vor.u32 %v362_v29, %v361_v0  ;;  %v366_v37 = vshll.u32 %v365_v15, 23  ;;  %v1361_v12 = vpop.eup %1360 }
 0x142   : > { %v902_v46 = vxor.u32 2147483648, %v1359_v28  ;;  %v761_v43 = vadd.s32 536870912, %v760_v58  ;;  %v604_v45 = vand.u32 8388607, %v597_v4  ;;  %v607_v36 = vadd.s32 1, %v1224_v19 }
 0x143   : > { %v899_v32 = vxor.u32 2147483648, %v1361_v12  ;;  %vm901_vm10 = vcmp.eq.s32.totalorder %v896_v60, 2  ;;  %v367_v51 = vor.u32 4788187, %v366_v37  ;;  %v375_v31 = vsel %vm290_vm7, %v374_v22, %v1743_v21 }
 0x144   : > { %v903_v49 = vsel %vm901_vm10, %v902_v46, %v1361_v12  ;;  %v1842_v17 = vshrl.u32 %v761_v43, 30  ;;  %vm608_vm11 = vcmp.gt.s32.totalorder %v607_v36, 0  ;;  %v1012_v55 = vand.u32 2139095040, %v1556_v24 }
 0x145   : > { %v900_v41 = vsel %vm898_vm9, %v1359_v28, %v899_v32  ;;  %v368_v40 = vand.u32 2147483647, %v367_v51  ;;  %v370_v53 = vcvt.s32.f32 %v363_v30  ;;  %v609_v16 = vsel %vm608_vm11, %v607_v36, 0 }
 0x146   : > { %v904_v57 = vsel %vm897_vm8, %v900_v41, %v903_v49  ;;  %v377_v59 = vsel %vm1832_vm6, 0, %v375_v31  ;;  %v763_v47 = vshll.u32 %v1842_v17, 30  ;;  %v605_v21 = vor.u32 8388608, %v604_v45 }
 0x147   : > { %v905_v39 = vsel %vm895_vm4, nan, %v904_v57  ;;  %v371_v2 = vmul.f32 %v370_v53, %v368_v40  ;;  %v611_v3 = vand.u32 31, %v609_v16  ;;  %v610_v33 = vshrl.u32 %v609_v16, 5 }
 0x148   : > { %1117 = vst [vmem:[%s1825_s30 + $0x28] sm:$0xff] %v905_v39  ;;  %v1853_v56 = vsub.s32 %v760_v58, %v763_v47  ;;  %v1013_v63 = vshrl.u32 %v1012_v55, 23  ;;  %v1855_v6 = vand.u32 3, %v377_v59  ;;  %v756_v60 = vadd.s32 %v1795_v35, %v1804_v62 }
 0x149   : > { %v372_v5 = vxor.u32 2147483648, %v371_v2  ;;  %v612_v38 = vsub.s32 32, %v611_v3  ;;  %v614_v8 = vshll.u32 %v1450_v44, %v611_v3  ;;  %v1861_v10 = vshll.u32 %v605_v21, 8 }
 0x14a   : > { %v766_v7 = vsub.s32 0, %v1853_v56  ;;  %v1009_v11 = vand.u32 2147483647, %v1556_v24  ;;  %v617_v20 = vshll.u32 %v1451_v48, %v611_v3  ;;  %vm629_vm12 = vcmp.lt.s32.totalorder %v610_v33, 1 }
 0x14b   : > { %v373_v18 = vsel %vm290_vm7, %v372_v5, %v371_v2  ;;  %v615_v22 = vshrl.u32 %v1451_v48, %v612_v38  ;;  %v618_v25 = vshrl.u32 %v1452_v50, %v612_v38  ;;  %v1240_v1 = vadd.s32 4294967169, %v1013_v63 }
 0x14c   : > { %v376_v35 = vsel %vm1832_vm6, %v1543_v13, %v373_v18  ;;  %v1229_v62 = vmin.u32 %v766_v7, %v1853_v56  ;;  %v620_v15 = vshll.u32 %v1452_v50, %v611_v3  ;;  %v613_v58 = vshrl.u32 %v1450_v44, %v612_v38 }
 0x14d   : > { %1362 = vcosq.f32 %v376_v35  ;;  %v616_v0 = vor.u32 %v615_v22, %v614_v8  ;;  %v619_v29 = vor.u32 %v618_v25, %v617_v20  ;;  %v621_v19 = vshrl.u32 %v1453_v52, %v612_v38 }
 0x14e   : > { %1364 = vsinq.f32 %v376_v35  ;;  %v768_v42 = vclz %v1229_v62  ;;  %v623_v28 = vshll.u32 %v1453_v52, %v611_v3  ;;  %v624_v9 = vshrl.u32 %v1454_v54, %v612_v38 }
 0x14f   : > { %v626_v30 = vshll.u32 %v1454_v54, %v611_v3  ;;  %v627_v37 = vshrl.u32 %v1455_v61, %v612_v38  ;;  %v622_v46 = vor.u32 %v621_v19, %v620_v15  ;;  %vm631_vm13 = vcmp.lt.s32.totalorder %v610_v33, 3 }
 0x150   : > { %v1230_v12 = vadd.s32 4294967294, %v768_v42  ;;  %vm632_vm14 = vcmp.lt.s32.totalorder %v610_v33, 4  ;;  %v625_v43 = vor.u32 %v624_v9, %v623_v28  ;;  %v633_v36 = vsel %vm629_vm12, %v613_v58, %v616_v0 }
 0x151   : > { %v628_v45 = vor.u32 %v627_v37, %v626_v30  ;;  %v637_v32 = vsel %vm629_vm12, %v616_v0, %v619_v29  ;;  %v634_v51 = vsel %vm632_vm14, %v622_v46, 2102212464  ;;  %v641_v31 = vsel %vm629_vm12, %v619_v29, %v622_v46 }
 0x152   : > { %vm1231_vm15 = vcmp.lt.s32.totalorder %v1230_v12, 0  ;;  %v1019_v49 = vadd.s32 1, %v1240_v1  ;;  %vm382_vm0 = vcmp.lt.s32.totalorder %v1855_v6, 2  ;;  %v635_v41 = vsel %vm631_vm13, %v619_v29, %v634_v51 }
 0x153   : > { %v771_v55 = vsel %vm1231_vm15, 0, %v1230_v12  ;;  %v638_v40 = vsel %vm632_vm14, %v625_v43, 920167782  ;;  %v642_v53 = vsel %vm632_vm14, %v628_v45, 1326507024  ;;  %vm380_vm1 = vweird.f32 %v1543_v13 }
 0x154   : > { %v772_v16 = vsub.s32 32, %v771_v55  ;;  %v773_v57 = vshll.u32 %v1853_v56, %v771_v55  ;;  %v776_v59 = vsub.s32 4294967266, %v771_v55  ;;  %vm630_vm2 = vcmp.lt.s32.totalorder %v610_v33, 2 }
 0x155   : > { %v636_v47 = vsel %vm630_vm2, %v633_v36, %v635_v41  ;;  %v639_v21 = vsel %vm631_vm13, %v622_v46, %v638_v40  ;;  %v643_v39 = vsel %vm631_vm13, %v625_v43, %v642_v53  ;;  %vm1020_vm3 = vcmp.gt.s32.totalorder %v1019_v49, 0 }
 0x156   : > { %v774_v2 = vshrl.u32 %v756_v60, %v772_v16  ;;  %v777_v3 = vadd.s32 127, %v776_v59  ;;  %v640_v63 = vsel %vm630_vm2, %v637_v32, %v639_v21  ;;  %v644_v5 = vsel %vm630_vm2, %v641_v31, %v643_v39 }
 0x157   : > { %v1363_v38 = vpop.eup %1362  ;;  %v1890_v7 = vmul.u32.u64.low %v1861_v10, %v644_v5  ;;  %v1891_v8 = vmul.u32.u64.high %v1861_v10, %v644_v5, %v1890_v7  ;;  %v1894_v18 = vmul.u32.u64.low %v1861_v10, %v640_v63  ;;  %v1895_v56 = vmul.u32.u64.high %v1861_v10, %v640_v63, %v1894_v18 }
 0x158   : > { %v1365_v22 = vpop.eup %1364  ;;  %v387_v20 = vxor.u32 2147483648, %v1363_v38  ;;  %v775_v25 = vor.u32 %v774_v2, %v773_v57  ;;  %v778_v33 = vshll.u32 %v777_v3, 23  ;;  %v1021_v35 = vsel %vm1020_vm3, %v1019_v49, 0 }
 0x159   : > { %vm383_vm4 = vcmp.eq.s32.totalorder %v1855_v6, 0  ;;  %v384_v60 = vxor.u32 2147483648, %v1365_v22  ;;  %vm386_vm5 = vcmp.eq.s32.totalorder %v1855_v6, 2  ;;  %v1023_v62 = vand.u32 31, %v1021_v35 }
 0x15a   : > { %v388_v1 = vsel %vm386_vm5, %v387_v20, %v1365_v22  ;;  %vm1902_vm6 = vcmp.le.f32.partialorder %v700_v26, 0.7853982  ;;  %v779_v29 = vor.u32 4788187, %v778_v33  ;;  %v786_v15 = vsub.s32 4, %v1842_v17 }
 0x15b   : > { %v1016_v42 = vand.u32 8388607, %v1009_v11  ;;  %v385_v58 = vsel %vm383_vm4, %v1363_v38, %v384_v60  ;;  %v652_v19 = vmul.u32 %v1861_v10, %v636_v47  ;;  %vm654_vm7 = vc.u32 %v1891_v8, %v1894_v18 }
 0x15c   : > { %v655_v28 = vadd.s32 1, %v1895_v56  ;;  %v389_v26 = vsel %vm382_vm0, %v385_v58, %v388_v1  ;;  %v780_v9 = vand.u32 2147483647, %v779_v29  ;;  %v782_v30 = vcvt.s32.f32 %v775_v25 }
 0x15d   : > { %v1024_v37 = vsub.s32 32, %v1023_v62  ;;  %v390_v12 = vsel %vm380_vm1, nan, %v389_v26  ;;  %v1022_v43 = vshrl.u32 %v1021_v35, 5  ;;  %v1026_v45 = vshll.u32 %v1450_v44, %v1023_v62 }
 0x15e   : > { %v656_v46 = vsel %vm654_vm7, %v655_v28, %v1895_v56  ;;  %1112 = vst [vmem:[%s1825_s30] sm:$0xff] %v390_v12  ;;  %v783_v10 = vmul.f32 %v782_v30, %v780_v9  ;;  %v1029_v51 = vshll.u32 %v1451_v48, %v1023_v62  ;;  %v1035_v49 = vshll.u32 %v1453_v52, %v1023_v62 }
 0x15f   : > { %v657_v36 = vadd.s32 %v656_v46, %v652_v19  ;;  %v1027_v32 = vshrl.u32 %v1451_v48, %v1024_v37  ;;  %v1030_v6 = vshrl.u32 %v1452_v50, %v1024_v37  ;;  %v1033_v31 = vshrl.u32 %v1453_v52, %v1024_v37 }
 0x160   : > { %v1036_v13 = vshrl.u32 %v1454_v54, %v1024_v37  ;;  %vm702_vm8 = vcmp.lt.s32.totalorder %v1545_v14, 0  ;;  %v784_v55 = vxor.u32 2147483648, %v783_v10  ;;  %v1032_v40 = vshll.u32 %v1452_v50, %v1023_v62 }
 0x161   : > { %v658_v41 = vadd.s32 536870912, %v657_v36  ;;  %v1028_v53 = vor.u32 %v1027_v32, %v1026_v45  ;;  %v1031_v16 = vor.u32 %v1030_v6, %v1029_v51  ;;  %v1039_v59 = vshrl.u32 %v1455_v61, %v1024_v37 }
 0x162   : > { %v1037_v57 = vor.u32 %v1036_v13, %v1035_v49  ;;  %v785_v47 = vsel %vm702_vm8, %v784_v55, %v783_v10  ;;  %v1034_v39 = vor.u32 %v1033_v31, %v1032_v40  ;;  %v1038_v2 = vshll.u32 %v1454_v54, %v1023_v62 }
 0x163   : > { %v1929_v21 = vshrl.u32 %v658_v41, 30  ;;  %v787_v3 = vsel %vm702_vm8, %v786_v15, %v1842_v17  ;;  %v788_v63 = vsel %vm1902_vm6, %v1545_v14, %v785_v47  ;;  %v1017_v5 = vor.u32 8388608, %v1016_v42 }
 0x164   : > { %vm1041_vm9 = vcmp.lt.s32.totalorder %v1022_v43, 1  ;;  %1366 = vcosq.f32 %v788_v63  ;;  %v1040_v7 = vor.u32 %v1039_v59, %v1038_v2  ;;  %vm1044_vm10 = vcmp.lt.s32.totalorder %v1022_v43, 4 }
 0x165   : > { %v660_v38 = vshll.u32 %v1929_v21, 30  ;;  %1368 = vsinq.f32 %v788_v63  ;;  %vm1043_vm11 = vcmp.lt.s32.totalorder %v1022_v43, 3  ;;  %v1049_v56 = vsel %vm1041_vm9, %v1028_v53, %v1031_v16 }
 0x166   : > { %v1050_v22 = vsel %vm1044_vm10, %v1037_v57, 920167782  ;;  %v789_v20 = vsel %vm1902_vm6, 0, %v787_v3  ;;  %vm1042_vm12 = vcmp.lt.s32.totalorder %v1022_v43, 2  ;;  %v1046_v33 = vsel %vm1044_vm10, %v1034_v39, 2102212464 }
 0x167   : > { %v661_v17 = vsub.s32 %v657_v36, %v660_v38  ;;  %v1051_v25 = vsel %vm1043_vm11, %v1034_v39, %v1050_v22  ;;  %v1057_v60 = vshll.u32 %v1017_v5, 8  ;;  %v1025_v1 = vshrl.u32 %v1450_v44, %v1024_v37 }
 0x168   : > { %v1052_v35 = vsel %vm1042_vm12, %v1049_v56, %v1051_v25  ;;  %v1053_v29 = vsel %vm1041_vm9, %v1031_v16, %v1034_v39  ;;  %v1054_v15 = vsel %vm1044_vm10, %v1040_v7, 1326507024  ;;  %v793_v42 = vand.u32 3, %v789_v20 }
 0x169   : > { %v663_v62 = vsub.s32 0, %v661_v17  ;;  %v1055_v58 = vsel %vm1043_vm11, %v1037_v57, %v1054_v15  ;;  %v1945_v19 = vmul.u32.u64.low %v1057_v60, %v1052_v35  ;;  %v1946_v0 = vmul.u32.u64.high %v1057_v60, %v1052_v35, %v1945_v19 }
 0x16a   : > { %v1045_v26 = vsel %vm1041_vm9, %v1025_v1, %v1028_v53  ;;  %v1047_v9 = vsel %vm1043_vm11, %v1031_v16, %v1046_v33  ;;  %v1056_v30 = vsel %vm1042_vm12, %v1053_v29, %v1055_v58  ;;  %v497_v12 = vand.u32 2139095040, %v1558_v27 }
 0x16b   : > { %v1225_v28 = vmin.u32 %v663_v62, %v661_v17  ;;  %vm792_vm13 = vweird.f32 %v1545_v14  ;;  %v1954_v46 = vmul.u32.u64.low %v1057_v60, %v1056_v30  ;;  %v1955_v45 = vmul.u32.u64.high %v1057_v60, %v1056_v30, %v1954_v46 }
 0x16c   : > { %vm794_vm14 = vcmp.lt.s32.totalorder %v793_v42, 2  ;;  %v1048_v10 = vsel %vm1042_vm12, %v1045_v26, %v1047_v9  ;;  %v1067_v36 = vadd.s32 1, %v1946_v0  ;;  %v498_v32 = vshrl.u32 %v497_v12, 23 }
 0x16d   : > { %v665_v37 = vclz %v1225_v28  ;;  %vm795_vm15 = vcmp.eq.s32.totalorder %v793_v42, 0  ;;  %vm798_vm0 = vcmp.eq.s32.totalorder %v793_v42, 2  ;;  %v494_v31 = vand.u32 2147483647, %v1558_v27 }
 0x16e   : > { %v1367_v51 = vpop.eup %1366  ;;  %v653_v55 = vadd.s32 %v1894_v18, %v1891_v8  ;;  %v683_v41 = vsub.s32 4, %v1929_v21  ;;  %v1220_v40 = vadd.s32 4294967169, %v498_v32  ;;  %v1064_v43 = vmul.u32 %v1057_v60, %v1048_v10 }
 0x16f   : > { %v1226_v6 = vadd.s32 4294967294, %v665_v37  ;;  %v1369_v49 = vpop.eup %1368  ;;  %v799_v13 = vxor.u32 2147483648, %v1367_v51  ;;  %vm1066_vm2 = vc.u32 %v1955_v45, %v1945_v19  ;;  %v501_v8 = vand.u32 8388607, %v494_v31 }
 0x170   : > { %v796_v53 = vxor.u32 2147483648, %v1369_v49  ;;  %v1068_v59 = vsel %vm1066_vm2, %v1067_v36, %v1946_v0  ;;  %v504_v47 = vadd.s32 1, %v1220_v40  ;;  %vm1975_vm4 = vcmp.le.f32.partialorder %v597_v4, 0.7853982 }
 0x171   : > { %vm1227_vm1 = vcmp.lt.s32.totalorder %v1226_v6, 0  ;;  %v800_v16 = vsel %vm798_vm0, %v799_v13, %v1369_v49  ;;  %v1069_v5 = vadd.s32 %v1068_v59, %v1064_v43  ;;  %vm599_vm5 = vcmp.lt.s32.totalorder %v1554_v23, 0 }
 0x172   : > { %v668_v57 = vsel %vm1227_vm1, 0, %v1226_v6  ;;  %v797_v39 = vsel %vm795_vm15, %v1367_v51, %v796_v53  ;;  %vm505_vm3 = vcmp.gt.s32.totalorder %v504_v47, 0  ;;  %v684_v1 = vsel %vm599_vm5, %v683_v41, %v1929_v21 }
 0x173   : > { %v669_v2 = vsub.s32 32, %v668_v57  ;;  %v673_v3 = vsub.s32 4294967266, %v668_v57  ;;  %v801_v18 = vsel %vm794_vm14, %v797_v39, %v800_v16  ;;  %v670_v63 = vshll.u32 %v661_v17, %v668_v57 }
 0x174   : > { %v802_v38 = vsel %vm792_vm13, nan, %v801_v18  ;;  %v506_v22 = vsel %vm505_vm3, %v504_v47, 0  ;;  %v1070_v20 = vadd.s32 536870912, %v1069_v5  ;;  %v502_v29 = vor.u32 8388608, %v501_v8 }
 0x175   : > { %v671_v7 = vshrl.u32 %v653_v55, %v669_v2  ;;  %v674_v56 = vadd.s32 127, %v673_v3  ;;  %1116 = vst [vmem:[%s1825_s30 + $0x20] sm:$0xff] %v802_v38  ;;  %v508_v25 = vand.u32 31, %v506_v22  ;;  %v909_v15 = vand.u32 2139095040, %v1561_v34 }
 0x176   : > { %v1980_v17 = vshrl.u32 %v1070_v20, 30  ;;  %v507_v21 = vshrl.u32 %v506_v22, 5  ;;  %v686_v36 = vsel %vm1975_vm4, 0, %v684_v1  ;;  %v2002_v43 = vshll.u32 %v502_v29, 8 }
 0x177   : > { %v672_v33 = vor.u32 %v671_v7, %v670_v63  ;;  %v675_v35 = vshll.u32 %v674_v56, 23  ;;  %v509_v14 = vsub.s32 32, %v508_v25  ;;  %v511_v4 = vshll.u32 %v1450_v44, %v508_v25 }
 0x178   : > { %v1072_v58 = vshll.u32 %v1980_v17, 30  ;;  %v514_v37 = vshll.u32 %v1451_v48, %v508_v25  ;;  %v517_v46 = vshll.u32 %v1452_v50, %v508_v25  ;;  %v520_v51 = vshll.u32 %v1453_v52, %v508_v25 }
 0x179   : > { %v676_v62 = vor.u32 4788187, %v675_v35  ;;  %v679_v42 = vcvt.s32.f32 %v672_v33  ;;  %v512_v0 = vshrl.u32 %v1451_v48, %v509_v14  ;;  %v515_v26 = vshrl.u32 %v1452_v50, %v509_v14 }
 0x17a   : > { %v518_v9 = vshrl.u32 %v1453_v52, %v509_v14  ;;  %v521_v30 = vshrl.u32 %v1454_v54, %v509_v14  ;;  %v1992_v12 = vsub.s32 %v1069_v5, %v1072_v58  ;;  %v524_v55 = vshrl.u32 %v1455_v61, %v509_v14 }
 0x17b   : > { %v677_v28 = vand.u32 2147483647, %v676_v62  ;;  %v513_v32 = vor.u32 %v512_v0, %v511_v4  ;;  %v516_v49 = vor.u32 %v515_v26, %v514_v37  ;;  %v523_v53 = vshll.u32 %v1454_v54, %v508_v25 }
 0x17c   : > { %v1075_v6 = vsub.s32 0, %v1992_v12  ;;  %v519_v13 = vor.u32 %v518_v9, %v517_v46  ;;  %v522_v40 = vor.u32 %v521_v30, %v520_v51  ;;  %v510_v57 = vshrl.u32 %v1450_v44, %v509_v14 }
 0x17d   : > { %v680_v10 = vmul.f32 %v679_v42, %v677_v28  ;;  %vm526_vm6 = vcmp.lt.s32.totalorder %v507_v21, 1  ;;  %v910_v59 = vshrl.u32 %v909_v15, 23  ;;  %v525_v39 = vor.u32 %v524_v55, %v523_v53 }
 0x17e   : > { %v1241_v16 = vmin.u32 %v1075_v6, %v1992_v12  ;;  %vm527_vm7 = vcmp.lt.s32.totalorder %v507_v21, 2  ;;  %vm529_vm8 = vcmp.lt.s32.totalorder %v507_v21, 4  ;;  %v534_v18 = vsel %vm526_vm6, %v513_v32, %v516_v49 }
 0x17f   : > { %v681_v41 = vxor.u32 2147483648, %v680_v10  ;;  %v531_v8 = vsel %vm529_vm8, %v519_v13, 2102212464  ;;  %vm528_vm9 = vcmp.lt.s32.totalorder %v507_v21, 3  ;;  %v530_v63 = vsel %vm526_vm6, %v510_v57, %v513_v32 }
 0x180   : > { %v1077_v3 = vclz %v1241_v16  ;;  %v535_v5 = vsel %vm529_vm8, %v522_v40, 920167782  ;;  %v538_v56 = vsel %vm526_vm6, %v516_v49, %v519_v13  ;;  %v532_v22 = vsel %vm528_vm9, %v516_v49, %v531_v8 }
 0x181   : > { %v682_v47 = vsel %vm599_vm5, %v681_v41, %v680_v10  ;;  %v536_v7 = vsel %vm528_vm9, %v519_v13, %v535_v5  ;;  %v539_v25 = vsel %vm529_vm8, %v525_v39, 1326507024  ;;  %v1236_v33 = vadd.s32 4294967169, %v910_v59 }
 0x182   : > { %v685_v2 = vsel %vm1975_vm4, %v1554_v23, %v682_v47  ;;  %v1242_v38 = vadd.s32 4294967294, %v1077_v3  ;;  %v537_v20 = vsel %vm527_vm7, %v534_v18, %v536_v7  ;;  %v540_v35 = vsel %vm528_vm9, %v522_v40, %v539_v25 }
 0x183   : > { %1370 = vcosq.f32 %v685_v2  ;;  %v2016_v60 = vmul.u32.u64.low %v2002_v43, %v537_v20  ;;  %v2017_v14 = vmul.u32.u64.high %v2002_v43, %v537_v20, %v2016_v60  ;;  %v690_v62 = vand.u32 3, %v686_v36 }
 0x184   : > { %1372 = vsinq.f32 %v685_v2  ;;  %vm1243_vm10 = vcmp.lt.s32.totalorder %v1242_v38, 0  ;;  %v541_v29 = vsel %vm527_vm7, %v538_v56, %v540_v35  ;;  %v916_v15 = vadd.s32 1, %v1236_v33 }
 0x185   : > { %v1080_v1 = vsel %vm1243_vm10, 0, %v1242_v38  ;;  %v1065_v42 = vadd.s32 %v1945_v19, %v1955_v45  ;;  %v533_v0 = vsel %vm527_vm7, %v530_v63, %v532_v22  ;;  %v552_v46 = vadd.s32 1, %v2017_v14 }
 0x186   : > { %v1081_v58 = vsub.s32 32, %v1080_v1  ;;  %v1085_v4 = vsub.s32 4294967266, %v1080_v1  ;;  %v1082_v28 = vshll.u32 %v1992_v12, %v1080_v1  ;;  %vm917_vm11 = vcmp.gt.s32.totalorder %v916_v15, 0 }
 0x187   : > { %v2026_v26 = vmul.u32.u64.low %v2002_v43, %v541_v29  ;;  %v2027_v9 = vmul.u32.u64.high %v2002_v43, %v541_v29, %v2026_v26  ;;  %v918_v10 = vsel %vm917_vm11, %v916_v15, 0  ;;  %vm689_vm12 = vweird.f32 %v1554_v23 }
 0x188   : > { %v1083_v30 = vshrl.u32 %v1065_v42, %v1081_v58  ;;  %v1086_v37 = vadd.s32 127, %v1085_v4  ;;  %v920_v36 = vand.u32 31, %v918_v10  ;;  %vm1011_vm13 = vcmp.lt.s32.totalorder %v1556_v24, 0 }
 0x189   : > { %v906_v21 = vand.u32 2147483647, %v1561_v34  ;;  %v1095_v32 = vsub.s32 4, %v1980_v17  ;;  %v549_v51 = vmul.u32 %v2002_v43, %v533_v0  ;;  %vm551_vm14 = vc.u32 %v2027_v9, %v2016_v60 }
 0x18a   : > { %v1084_v19 = vor.u32 %v1083_v30, %v1082_v28  ;;  %v1087_v45 = vshll.u32 %v1086_v37, 23  ;;  %v921_v6 = vsub.s32 32, %v920_v36  ;;  %vm691_vm15 = vcmp.lt.s32.totalorder %v690_v62, 2 }
 0x18b   : > { %vm2039_vm0 = vcmp.le.f32.partialorder %v1009_v11, 0.7853982  ;;  %v553_v40 = vsel %vm551_vm14, %v552_v46, %v2017_v14  ;;  %vm692_vm1 = vcmp.eq.s32.totalorder %v690_v62, 0  ;;  %vm695_vm2 = vcmp.eq.s32.totalorder %v690_v62, 2 }
 0x18c   : > { %v1088_v41 = vor.u32 4788187, %v1087_v45  ;;  %v554_v43 = vadd.s32 %v553_v40, %v549_v51  ;;  %v1091_v59 = vcvt.s32.f32 %v1084_v19  ;;  %v913_v47 = vand.u32 8388607, %v906_v21 }
 0x18d   : > { %v1371_v12 = vpop.eup %1370  ;;  %v1096_v11 = vsel %vm1011_vm13, %v1095_v32, %v1980_v17  ;;  %v924_v3 = vshrl.u32 %v1451_v48, %v921_v6  ;;  %v923_v63 = vshll.u32 %v1450_v44, %v920_v36  ;;  %v927_v5 = vshrl.u32 %v1452_v50, %v921_v6 }
 0x18e   : > { %v1373_v49 = vpop.eup %1372  ;;  %v696_v13 = vxor.u32 2147483648, %v1371_v12  ;;  %v1089_v57 = vand.u32 2147483647, %v1088_v41  ;;  %v555_v2 = vadd.s32 536870912, %v554_v43  ;;  %v930_v56 = vshrl.u32 %v1453_v52, %v921_v6 }
 0x18f   : > { %v693_v53 = vxor.u32 2147483648, %v1373_v49  ;;  %v933_v22 = vshrl.u32 %v1454_v54, %v921_v6  ;;  %v926_v20 = vshll.u32 %v1451_v48, %v920_v36  ;;  %v932_v25 = vshll.u32 %v1453_v52, %v920_v36 }
 0x190   : > { %v697_v16 = vsel %vm695_vm2, %v696_v13, %v1373_v49  ;;  %v1092_v18 = vmul.f32 %v1091_v59, %v1089_v57  ;;  %v2055_v7 = vshrl.u32 %v555_v2, 30  ;;  %v936_v33 = vshrl.u32 %v1455_v61, %v921_v6 }
 0x191   : > { %v694_v39 = vsel %vm692_vm1, %v1371_v12, %v693_v53  ;;  %v919_v14 = vshrl.u32 %v918_v10, 5  ;;  %v925_v62 = vor.u32 %v924_v3, %v923_v63  ;;  %v929_v23 = vshll.u32 %v1452_v50, %v920_v36 }
 0x192   : > { %v698_v8 = vsel %vm691_vm15, %v694_v39, %v697_v16  ;;  %v1093_v17 = vxor.u32 2147483648, %v1092_v18  ;;  %v557_v35 = vshll.u32 %v2055_v7, 30  ;;  %v928_v29 = vor.u32 %v927_v5, %v926_v20 }
 0x193   : > { %v699_v38 = vsel %vm689_vm12, nan, %v698_v8  ;;  %v934_v15 = vor.u32 %v933_v22, %v932_v25  ;;  %v935_v42 = vshll.u32 %v1454_v54, %v920_v36  ;;  %v1098_v52 = vsel %vm2039_vm0, 0, %v1096_v11 }
 0x194   : > { %1115 = vst [vmem:[%s1825_s30 + $0x18] sm:$0xff] %v699_v38  ;;  %v1094_v1 = vsel %vm1011_vm13, %v1093_v17, %v1092_v18  ;;  %v558_v61 = vsub.s32 %v554_v43, %v557_v35  ;;  %v931_v58 = vor.u32 %v930_v56, %v929_v23  ;;  %v914_v4 = vor.u32 8388608, %v913_v47 }
 0x195   : > { %v1097_v48 = vsel %vm2039_vm0, %v1556_v24, %v1094_v1  ;;  %v937_v0 = vor.u32 %v936_v33, %v935_v42  ;;  %vm938_vm3 = vcmp.lt.s32.totalorder %v919_v14, 1  ;;  %vm941_vm4 = vcmp.lt.s32.totalorder %v919_v14, 4 }
 0x196   : > { %1374 = vcosq.f32 %v1097_v48  ;;  %v560_v50 = vsub.s32 0, %v558_v61  ;;  %v1102_v28 = vand.u32 3, %v1098_v52  ;;  %v922_v26 = vshrl.u32 %v1450_v44, %v921_v6 }
 0x197   : > { %1376 = vsinq.f32 %v1097_v48  ;;  %v946_v54 = vsel %vm938_vm3, %v925_v62, %v928_v29  ;;  %v947_v30 = vsel %vm941_vm4, %v934_v15, 920167782  ;;  %vm940_vm5 = vcmp.lt.s32.totalorder %v919_v14, 3 }
 0x198   : > { %v1221_v37 = vmin.u32 %v560_v50, %v558_v61  ;;  %v943_v46 = vsel %vm941_vm4, %v931_v58, 2102212464  ;;  %v950_v10 = vsel %vm938_vm3, %v928_v29, %v931_v58  ;;  %vm939_vm6 = vcmp.lt.s32.totalorder %v919_v14, 2 }
 0x199   : > { %v948_v36 = vsel %vm940_vm5, %v931_v58, %v947_v30  ;;  %v951_v19 = vsel %vm941_vm4, %v937_v0, 1326507024  ;;  %v954_v45 = vshll.u32 %v914_v4, 8  ;;  %v942_v32 = vsel %vm938_vm3, %v922_v26, %v925_v62 }
 0x19a   : > { %v562_v12 = vclz %v1221_v37  ;;  %v949_v51 = vsel %vm939_vm6, %v946_v54, %v948_v36  ;;  %v952_v49 = vsel %vm940_vm5, %v934_v15, %v951_v19  ;;  %v944_v13 = vsel %vm940_vm5, %v928_v29, %v943_v46 }
 0x19b   : > { %v953_v55 = vsel %vm939_vm6, %v950_v10, %v952_v49  ;;  %v2074_v41 = vmul.u32.u64.low %v954_v45, %v949_v51  ;;  %v2075_v40 = vmul.u32.u64.high %v954_v45, %v949_v51, %v2074_v41  ;;  %v945_v43 = vsel %vm939_vm6, %v942_v32, %v944_v13 }
 0x19c   : > { %v1222_v44 = vadd.s32 4294967294, %v562_v12  ;;  %v2077_v6 = vmul.u32.u64.low %v954_v45, %v953_v55  ;;  %v2078_v53 = vmul.u32.u64.high %v954_v45, %v953_v55, %v2077_v6  ;;  %vm1104_vm8 = vcmp.eq.s32.totalorder %v1102_v28, 0 }
 0x19d   : > { %vm1107_vm9 = vcmp.eq.s32.totalorder %v1102_v28, 2  ;;  %v964_v59 = vadd.s32 1, %v2075_v40  ;;  %v550_v11 = vadd.s32 %v2016_v60, %v2027_v9  ;;  %v961_v63 = vmul.u32 %v954_v45, %v945_v43 }
 0x19e   : > { %vm1223_vm7 = vcmp.lt.s32.totalorder %v1222_v44, 0  ;;  %vm963_vm10 = vc.u32 %v2078_v53, %v2074_v41  ;;  %vm1103_vm11 = vcmp.lt.s32.totalorder %v1102_v28, 2  ;;  %vm1101_vm12 = vweird.f32 %v1556_v24 }
 0x19f   : > { %v565_v57 = vsel %vm1223_vm7, 0, %v1222_v44  ;;  %v965_v22 = vsel %vm963_vm10, %v964_v59, %v2075_v40  ;;  %vm496_vm13 = vcmp.lt.s32.totalorder %v1558_v27, 0  ;;  %vm2091_vm14 = vcmp.le.f32.partialorder %v494_v31, 0.7853982 }
 0x1a0   : > { %v1375_v16 = vpop.eup %1374  ;;  %v566_v2 = vsub.s32 32, %v565_v57  ;;  %v570_v3 = vsub.s32 4294967266, %v565_v57  ;;  %v567_v18 = vshll.u32 %v558_v61, %v565_v57  ;;  %v966_v20 = vadd.s32 %v965_v22, %v961_v63 }
 0x1a1   : > { %v1377_v47 = vpop.eup %1376  ;;  %v1108_v39 = vxor.u32 2147483648, %v1375_v16  ;;  %v580_v58 = vsub.s32 4, %v2055_v7  ;;  %v962_v30 = vadd.s32 %v2074_v41, %v2078_v53  ;;  %vm586_vm3 = vweird.f32 %v1558_v27 }
 0x1a2   : > { %v1105_v8 = vxor.u32 2147483648, %v1377_v47  ;;  %v568_v38 = vshrl.u32 %v550_v11, %v566_v2  ;;  %v571_v56 = vadd.s32 127, %v570_v3  ;;  %v967_v35 = vadd.s32 536870912, %v966_v20 }
 0x1a3   : > { %v1109_v5 = vsel %vm1107_vm9, %v1108_v39, %v1377_v47  ;;  %v581_v28 = vsel %vm496_vm13, %v580_v58, %v2055_v7  ;;  %vm908_vm4 = vcmp.lt.s32.totalorder %v1561_v34, 0  ;;  %vm907_vm5 = vcmp.le.f32.partialorder %v906_v21, 0.7853982 }
 0x1a4   : > { %v1106_v17 = vsel %vm1104_vm8, %v1375_v16, %v1105_v8  ;;  %v569_v9 = vor.u32 %v568_v38, %v567_v18  ;;  %v572_v25 = vshll.u32 %v571_v56, 23  ;;  %v968_v62 = vshrl.u32 %v967_v35, 30 }
 0x1a5   : > { %v1110_v60 = vsel %vm1103_vm11, %v1106_v17, %v1109_v5  ;;  %v583_v31 = vsel %vm2091_vm14, 0, %v581_v28  ;;  %vm998_vm9 = vweird.f32 %v1561_v34 }
 0x1a6   : > { %v1111_v33 = vsel %vm1101_vm12, nan, %v1110_v60  ;;  %v573_v14 = vor.u32 4788187, %v572_v25  ;;  %v576_v1 = vcvt.s32.f32 %v569_v9  ;;  %v969_v29 = vshll.u32 %v968_v62, 30 }
 0x1a7   : > { %1119 = vst [vmem:[%s1825_s30 + $0x38] sm:$0xff] %v1111_v33  ;;  %v587_v10 = vand.u32 3, %v583_v31  ;;  %v992_v47 = vsub.s32 4, %v968_v62 }
 0x1a8   : > { %v574_v23 = vand.u32 2147483647, %v573_v14  ;;  %v970_v42 = vsub.s32 %v966_v20, %v969_v29 }
 0x1a9   : > { %vm592_vm0 = vcmp.eq.s32.totalorder %v587_v10, 2  ;;  %vm589_vm1 = vcmp.eq.s32.totalorder %v587_v10, 0  ;;  %vm588_vm2 = vcmp.lt.s32.totalorder %v587_v10, 2 }
 0x1aa   : > { %v577_v15 = vmul.f32 %v576_v1, %v574_v23  ;;  %v972_v52 = vsub.s32 0, %v970_v42 }
 0x1ac   : > { %v578_v48 = vxor.u32 2147483648, %v577_v15  ;;  %v1237_v0 = vmin.u32 %v972_v52, %v970_v42 }
 0x1ae   : > { %v579_v61 = vsel %vm496_vm13, %v578_v48, %v577_v15  ;;  %v974_v50 = vclz %v1237_v0 }
 0x1af   : > { %v582_v4 = vsel %vm2091_vm14, %v1558_v27, %v579_v61  ;;  %v993_v27 = vsel %vm908_vm4, %v992_v47, %v968_v62 }
 0x1b0   : > { %1378 = vcosq.f32 %v582_v4  ;;  %v1238_v26 = vadd.s32 4294967294, %v974_v50  ;;  %v995_v11 = vsel %vm907_vm5, 0, %v993_v27 }
 0x1b1   : > { %1380 = vsinq.f32 %v582_v4  ;;  %v999_v2 = vand.u32 3, %v995_v11 }
 0x1b2   : > { %vm1239_vm15 = vcmp.lt.s32.totalorder %v1238_v26, 0 }
 0x1b3   : > { %v977_v54 = vsel %vm1239_vm15, 0, %v1238_v26  ;;  %vm1004_vm6 = vcmp.eq.s32.totalorder %v999_v2, 2  ;;  %vm1001_vm7 = vcmp.eq.s32.totalorder %v999_v2, 0  ;;  %vm1000_vm8 = vcmp.lt.s32.totalorder %v999_v2, 2 }
 0x1b4   : > { %v978_v37 = vsub.s32 32, %v977_v54  ;;  %v982_v46 = vsub.s32 4294967266, %v977_v54  ;;  %v979_v36 = vshll.u32 %v970_v42, %v977_v54 }
 0x1b6   : > { %v980_v19 = vshrl.u32 %v962_v30, %v978_v37  ;;  %v983_v45 = vadd.s32 127, %v982_v46 }
 0x1b8   : > { %v981_v49 = vor.u32 %v980_v19, %v979_v36  ;;  %v984_v7 = vshll.u32 %v983_v45, 23 }
 0x1ba   : > { %v1379_v12 = vpop.eup %1378  ;;  %v985_v40 = vor.u32 4788187, %v984_v7  ;;  %v988_v53 = vcvt.s32.f32 %v981_v49 }
 0x1bb   : > { %v1381_v32 = vpop.eup %1380  ;;  %v593_v51 = vxor.u32 2147483648, %v1379_v12 }
 0x1bc   : > { %v590_v13 = vxor.u32 2147483648, %v1381_v32  ;;  %v986_v6 = vand.u32 2147483647, %v985_v40 }
 0x1bd   : > { %v594_v55 = vsel %vm592_vm0, %v593_v51, %v1381_v32 }
 0x1be   : > { %v591_v44 = vsel %vm589_vm1, %v1379_v12, %v590_v13  ;;  %v989_v16 = vmul.f32 %v988_v53, %v986_v6 }
 0x1bf   : > { %v595_v41 = vsel %vm588_vm2, %v591_v44, %v594_v55 }
 0x1c0   : > { %v596_v43 = vsel %vm586_vm3, nan, %v595_v41  ;;  %v990_v57 = vxor.u32 2147483648, %v989_v16 }
 0x1c1   : > { %1114 = vst [vmem:[%s1825_s30 + $0x10] sm:$0xff] %v596_v43 }
 0x1c2   : > { %v991_v59 = vsel %vm908_vm4, %v990_v57, %v989_v16 }
 0x1c3   : > { %v994_v39 = vsel %vm907_vm5, %v1561_v34, %v991_v59 }
 0x1c4   : > { %1382 = vcosq.f32 %v994_v39 }
 0x1c5   : > { %1384 = vsinq.f32 %v994_v39 }
 0x1ce   : > { %v1383_v3 = vpop.eup %1382 }
 0x1cf   : > { %v1385_v8 = vpop.eup %1384  ;;  %v1005_v18 = vxor.u32 2147483648, %v1383_v3 }
 0x1d0   : > { %v1002_v63 = vxor.u32 2147483648, %v1385_v8 }
 0x1d1   : > { %v1006_v21 = vsel %vm1004_vm6, %v1005_v18, %v1385_v8 }
 0x1d2   : > { %v1003_v5 = vsel %vm1001_vm7, %v1383_v3, %v1002_v63 }
 0x1d3   : > { %v1007_v38 = vsel %vm1000_vm8, %v1003_v5, %v1006_v21 }
 0x1d4   : > { %v1008_v56 = vsel %vm998_vm9, nan, %v1007_v38 }
 0x1d5   : > { %1118 = vst [vmem:[%s1825_s30 + $0x30] sm:$0xff] %v1008_v56 }
 0x1d6   : > { %1399 = shalt.err (!%p1396_p3)
}
 0x1d7   : > { %s1400_s21 = scalar_lea.hbm %s2114_s7, 1024  ;;  %s1404_s24 = scalar_lea.hbm %s2165_s2, 2048 }
 0x1d8   : > { %p1401_p4 = scmp.ne.s32.totalorder %s2114_s7, %s1400_s21  ;;  %p1405_p9 = scmp.lt.u32.totalorder %s2114_s7, %s2165_s2 }
 0x1d9   : > { %p1406_p10 = scmp.lt.u32.totalorder %s1404_s24, %s1400_s21  ;;  %p1408_p12 = scmp.lt.u32.totalorder %s1400_s21, %s2114_s7 }
 0x1da   : > { %p1402_p7 = pnand %p1401_p4, %p1512_p5 }
 0x1db   : > { %p1407_p11 = por %p1406_p10, %p1405_p9 }
 0x1dc   : > { %p1403_p8 = pneg %p1402_p7 }
 0x1dd   : > { %p1409_p13 = por %p1408_p12, %p1407_p11 }
 0x1df   : > { %p1410_p0 = pnand %p1409_p13, %p1403_p8 }
 0x1e1   : > { %1413 = shalt.err (!%p1410_p0)
}
 0x1e2   : > { %s1457_s27 = smov 128   ;;  %s1458_s28 = smov 8  }
 0x1e3   : > { %1307 = dma.vmem_to_hbm [thread:$0]  (%p1512_p5), %s2116_s4, 1024, %s2114_s7, %s2122_s8, %s1457_s27, %s1457_s27, %s1458_s28  }
 0x1e4 PF: > { %p1313_p1 = scmp.ge.s32.totalorder %s1448_s12, 2  ;;  %s1149_s29 = sand.u32 1, %s1436_s9  }
 0x1e5   : > { %s1150_s30 = scalar_lea.sflag [#allocation3], %s1149_s29 }
 0x1e6   : > { %p1310_p2 = pnand %p1313_p1, %p1516_p6 }
 0x1e8   : > { %1431 = dma.done.wait (!%p1310_p2), %s1150_s30, 1024  }
 0x1e9   : > { %1433 = vsyncadd (!%p1310_p2), %s1150_s30, 4294966272  ;;  %p12_p3 = scmp.ge.s32.totalorder %s1499_s15, 4   ;;  %s2182_s9 = smov %s1440_s10 }
 0x1ea   : > { %s2183_s10 = smov %s1444_s11  ;;  %s2184_s11 = smov %s1510_s18 }
 0x1eb   : > { %s2185_s12 = smov %s1499_s15  ;;  %14 = sbr.rel (!%p12_p3) target bundleno = 3 (0x3), region = 63 }
 0x1f2   :  { %1155 = vsyncpa [#allocation3], 1 }
 0x1f3   :  { %1157 = vsyncpa [#allocation3 + $0x1], 1 }

</bundles_post_ra>
